<compile_context>
chip_gen: v6e
topology: v6e:2x2x1
jax: 0.10.0
libtpu: 0.0.40
codegen_flags: <defaults>
</compile_context>

<pallas_src>
import jax
import jax.numpy as jnp
from jax import lax
from jax.experimental import pallas as pl
from jax.experimental.pallas import tpu as pltpu

_HALO_ROWS = 8  # one 8-sublane block per halo side


def _vmem_budget():
    """(f32-block byte budget, vmem_limit_bytes) — generation aware."""
    block_budget, vmem_limit = 4 << 20, 40 << 20            # safe on v7x (64 MiB VMEM)
    try:
        if pltpu.get_tpu_info().vmem_capacity_bytes >= (100 << 20):
            block_budget, vmem_limit = 8 << 20, 72 << 20     # v5e / v6e (128 MiB VMEM)
    except Exception:
        pass
    return block_budget, vmem_limit


def _choose_strip_rows(h, w, budget):
    """Strip height sized purely by a VMEM byte budget (no fixed row cap)."""
    bpr = 4 * max(w, 1)                        # f32 bytes per row (compute dtype)
    if h * bpr <= budget or h <= 8:
        return h                               # whole image in one strip
    rows = max(8, (budget // bpr) // 8 * 8)    # multiple of 8, strictly < h here
    return rows


def _lane_shift_zero(x, delta):
    """y[..., c] = x[..., c+delta] (f32), zero where c+delta falls off the image."""
    w = x.shape[-1]
    if w == 1:
        return jnp.zeros_like(x)
    axis = x.ndim - 1
    shift = (-delta) % w
    if x.ndim == 2 and w % 128 == 0:
        y = pltpu.roll(x, shift, axis)         # XLU lane rotate (free-ish slot)
    else:
        y = jnp.roll(x, shift, axis=axis)      # small / unaligned tiles
    col = lax.broadcasted_iota(jnp.int32, x.shape, axis)
    edge = (col == w - 1) if delta > 0 else (col == 0)
    return jnp.where(edge, 0.0, y)


def _row_roll(x, delta):
    """y[..., r, :] = x[..., (r+delta) mod rows, :]  (wraps; boundary rows fixed later)."""
    axis = x.ndim - 2
    rows = x.shape[axis]
    shift = (-delta) % rows
    if x.ndim == 2 and rows % 8 == 0:
        return pltpu.roll(x, shift, axis)      # XLU sublane rotate
    return jnp.roll(x, shift, axis=axis)


def _make_kernel(*, h_total, th, n_strips, has_halo):
    # Local row index (inside the last strip) of the image's bottom row.
    last_local = (h_total - 1) - (n_strips - 1) * th

    def kernel(x_ref, *args):
        if has_halo:
            top_ref, bot_ref, o_ref = args
        else:
            (o_ref,) = args
        odt = o_ref.dtype
        x = x_ref[...].astype(jnp.float32)      # (th, w) or (bt, th, w)

        def row(a, r):
            return a[..., r:r + 1, :]

        def write_row(r, val):
            if len(o_ref.shape) == 2:
                o_ref[r:r + 1, :] = val
            else:
                o_ref[:, r:r + 1, :] = val

        def lap_row(x_r, up_v, dn_v):
            return jnp.abs(up_v + dn_v
                           + _lane_shift_zero(x_r, -1)
                           + _lane_shift_zero(x_r, +1)
                           - 4.0 * x_r).astype(odt)

        # Bulk tile: in-strip rolls only.  Rows 0 / th-1 (and the image bottom row
        # of a partial last strip) are overwritten by the cheap fixups below.
        acc = _lane_shift_zero(x, -1) + _lane_shift_zero(x, +1) - 4.0 * x
        if th >= 2:
            acc = acc + _row_roll(x, -1)        # x[r-1]  (wraps at r == 0)
            acc = acc + _row_roll(x, +1)        # x[r+1]  (wraps at r == th-1)
        o_ref[...] = jnp.abs(acc).astype(odt)

        if th == 1:
            return                              # single-row image: bulk already exact

        if not has_halo:
            # Single strip == whole image; static boundary rows for every image in the block.
            write_row(0, lap_row(row(x, 0), 0.0, row(x, 1)))
            write_row(th - 1, lap_row(row(x, th - 1), row(x, th - 2), 0.0))
            return

        i = pl.program_id(1)
        is_last = i == n_strips - 1
        top_row = top_ref[_HALO_ROWS - 1:_HALO_ROWS, :].astype(jnp.float32)  # image row i*th - 1
        bot_row = bot_ref[0:1, :].astype(jnp.float32)                        # image row (i+1)*th

        # Strip row 0: up-neighbour comes from the halo (zero at the image top).
        up0 = jnp.where(i == 0, 0.0, top_row)
        dn0 = row(x, 1)
        if last_local == 0:                     # last strip holds a single valid row
            dn0 = jnp.where(is_last, 0.0, dn0)
        write_row(0, lap_row(row(x, 0), up0, dn0))

        # Strip row th-1: down-neighbour from the halo (zero at the image bottom).
        # On a partial last strip this row is out of range and its write is clipped.
        dn_last = jnp.where(is_last, 0.0, bot_row)
        write_row(th - 1, lap_row(row(x, th - 1), row(x, th - 2), dn_last))

        # Image bottom row sitting strictly inside a partial last strip.
        if 0 < last_local < th - 1:
            @pl.when(is_last)
            def _():
                write_row(last_local,
                          lap_row(row(x, last_local), row(x, last_local - 1), 0.0))

    return kernel


def laplace(x: jax.Array, *, strip_rows=None) -> jax.Array:
    """x: (N, 1, H, W) -> (N, 1, H, W), |conv2d(x, laplacian, padding=1)|."""
    assert x.ndim == 4 and x.shape[1] == 1, "Laplace expects NCHW with C == 1"
    n, _, h, w = x.shape

    # Lane-dense trick: the stencil is symmetric under an H<->W swap, so keep the
    # wide axis on lanes when W is lane-sparse but H is not.
    if w < 128 and h >= 128:
        xt = jnp.swapaxes(x, 2, 3)
        return jnp.swapaxes(laplace(xt, strip_rows=strip_rows), 2, 3)

    out_dtype = x.dtype if jnp.issubdtype(x.dtype, jnp.floating) else jnp.float32
    x3 = x.reshape(n, h, w)                     # original dtype; cast happens in-kernel

    budget, vmem_limit = _vmem_budget()
    th = _choose_strip_rows(h, w, budget) if strip_rows is None else min(int(strip_rows), h)
    n_strips = pl.cdiv(h, th)
    has_halo = n_strips > 1
    if has_halo:
        assert th % 8 == 0, "multi-strip tiling requires strip_rows % 8 == 0"

    # Batch several small images per grid step (only when one strip covers the
    # whole image); keep >= 2 grid steps when possible so both v7x cores get work.
    bt = 1
    if not has_halo and n > 1:
        per_img = max(1, h * w * 4)
        bt = max(1, min(n, budget // per_img))
        if bt >= n:
            bt = (n + 1) // 2
    n_batch = pl.cdiv(n, bt)

    rb = max(th // 8, 1)       # strip height in 8-row halo blocks
    nb8 = pl.cdiv(h, 8)        # number of 8-row halo blocks along H

    blk = (None, th, w) if bt == 1 else (bt, th, w)
    x_spec = pl.BlockSpec(blk, lambda b, i: (b, i, 0))
    out_spec = pl.BlockSpec(blk, lambda b, i: (b, i, 0))
    in_specs = [x_spec]
    operands = (x3,)
    if has_halo:
        top_spec = pl.BlockSpec((None, _HALO_ROWS, w),
                                lambda b, i: (b, jnp.maximum(i * rb - 1, 0), 0))
        bot_spec = pl.BlockSpec((None, _HALO_ROWS, w),
                                lambda b, i: (b, jnp.minimum((i + 1) * rb, nb8 - 1), 0))
        in_specs += [top_spec, bot_spec]
        operands = (x3, x3, x3)

    itemsize_in = jnp.dtype(x.dtype).itemsize
    itemsize_out = jnp.dtype(out_dtype).itemsize
    halo_bytes = 2 * _HALO_ROWS * w * itemsize_in * n * n_strips if has_halo else 0

    out = pl.pallas_call(
        _make_kernel(h_total=h, th=th, n_strips=n_strips, has_halo=has_halo),
        out_shape=jax.ShapeDtypeStruct((n, h, w), out_dtype),
        grid=(n_batch, n_strips),
        in_specs=in_specs,
        out_specs=out_spec,
        compiler_params=pltpu.CompilerParams(
            dimension_semantics=("parallel", "parallel"),
            vmem_limit_bytes=vmem_limit,
        ),
        cost_estimate=pl.CostEstimate(
            flops=7 * n * h * w,
            transcendentals=0,
            bytes_accessed=(itemsize_in + itemsize_out) * n * h * w + halo_bytes,
        ),
    )(*operands)
    return out.reshape(n, 1, h, w)


def _laplace_ref(x: jax.Array) -> jax.Array:
    """Pure-JAX reference (same stencil) for correctness checks."""
    xf = x.astype(jnp.float32)
    xp = jnp.pad(xf, ((0, 0), (0, 0), (1, 1), (1, 1)))
    lap = (xp[:, :, :-2, 1:-1] + xp[:, :, 2:, 1:-1]
           + xp[:, :, 1:-1, :-2] + xp[:, :, 1:-1, 2:]
           - 4.0 * xp[:, :, 1:-1, 1:-1])
    return jnp.abs(lap)


if __name__ == "__main__":
    key = jax.random.PRNGKey(0)
    k1, k2, k3, k4, k5 = jax.random.split(key, 5)

    # 1) Module-shaped input (NCHW, C == 1).
    x = jax.random.normal(k1, (2, 1, 16, 16), dtype=jnp.float32)
    y = jax.block_until_ready(laplace(x))
    assert y.shape == (2, 1, 16, 16) and y.dtype == jnp.float32
    assert jnp.allclose(y, _laplace_ref(x), atol=1e-5, rtol=1e-5), "mismatch (basic path)"

    # 2) Multi-strip halo path with a partial last strip (lane-dense W = 128).
    x2 = jax.random.normal(k2, (1, 1, 72, 128), dtype=jnp.float32)
    y2 = jax.block_until_ready(laplace(x2, strip_rows=32))
    assert jnp.allclose(y2, _laplace_ref(x2), atol=1e-5, rtol=1e-5), "mismatch (tiled path)"

    # 3) Partial last strip holding a single valid row (degenerate strip edge).
    x3 = jax.random.normal(k3, (1, 1, 65, 128), dtype=jnp.float32)
    y3 = jax.block_until_ready(laplace(x3, strip_rows=32))
    assert jnp.allclose(y3, _laplace_ref(x3), atol=1e-5, rtol=1e-5), "mismatch (1-row strip)"

    # 4) Batched small images with bf16 input (in-kernel cast, 3-D blocks).
    x4 = jax.random.normal(k4, (8, 1, 16, 16), dtype=jnp.bfloat16)
    y4 = jax.block_until_ready(laplace(x4))
    assert y4.dtype == jnp.bfloat16
    assert jnp.allclose(y4.astype(jnp.float32), _laplace_ref(x4), atol=0.1, rtol=0.1), \
        "mismatch (batched bf16 path)"

    # 5) Lane-sparse W with tall H -> H<->W swap dispatch.
    x5 = jax.random.normal(k5, (1, 1, 160, 32), dtype=jnp.float32)
    y5 = jax.block_until_ready(laplace(x5))
    assert jnp.allclose(y5, _laplace_ref(x5), atol=1e-5, rtol=1e-5), "mismatch (swapped path)"

    print("KERNEL_OK")
</pallas_src>

<mosaic_0001>
module attributes {stable_mosaic.version = 11 : i64} {
  func.func @kernel(%arg0: i32, %arg1: i32, %arg2: memref<1x16x16xf32, #tpu.memory_space<vmem>>, %arg3: memref<1x16x16xf32, #tpu.memory_space<vmem>>) attributes {dimension_semantics = [#tpu.dimension_semantics<parallel>, #tpu.dimension_semantics<parallel>], iteration_bounds = array<i64: 2, 1>, scalar_prefetch = 0 : i64, scratch_operands = 0 : i64, tpu.core_type = #tpu.core_type<tc>, window_params = [{transform_indices = @transform_0, window_bounds = array<i64: 1, 16, 16>}, {transform_indices = @transform_1, window_bounds = array<i64: 1, 16, 16>}]} {
    %c0 = arith.constant 0 : index
    %c0_0 = arith.constant 0 : index
    %c0_1 = arith.constant 0 : index
    %0 = vector.load %arg2[%c0, %c0_0, %c0_1] : memref<1x16x16xf32, #tpu.memory_space<vmem>>, vector<1x16x16xf32>
    %1 = vector.shape_cast %0 : vector<1x16x16xf32> to vector<16x16xf32>
    %2 = vector.extract_strided_slice %1 {offsets = [0, 15], sizes = [16, 1], strides = [1, 1]} : vector<16x16xf32> to vector<16x1xf32>
    %3 = vector.extract_strided_slice %1 {offsets = [0, 0], sizes = [16, 15], strides = [1, 1]} : vector<16x16xf32> to vector<16x15xf32>
    %4 = tpu.concatenate %2, %3 in 1 : vector<16x1xf32>, vector<16x15xf32> -> vector<16x16xf32>
    %5 = tpu.iota {dimensions = array<i32: 1>} : vector<16x16xi32>
    %c0_i32 = arith.constant 0 : i32
    %6 = vector.broadcast %c0_i32 : i32 to vector<16x16xi32>
    %7 = arith.cmpi eq, %5, %6 : vector<16x16xi32>
    %cst = arith.constant 0.000000e+00 : f32
    %8 = vector.broadcast %cst : f32 to vector<16x16xf32>
    %9 = arith.select %7, %8, %4 : vector<16x16xi1>, vector<16x16xf32>
    %10 = vector.extract_strided_slice %1 {offsets = [0, 1], sizes = [16, 15], strides = [1, 1]} : vector<16x16xf32> to vector<16x15xf32>
    %11 = vector.extract_strided_slice %1 {offsets = [0, 0], sizes = [16, 1], strides = [1, 1]} : vector<16x16xf32> to vector<16x1xf32>
    %12 = tpu.concatenate %10, %11 in 1 : vector<16x15xf32>, vector<16x1xf32> -> vector<16x16xf32>
    %13 = tpu.iota {dimensions = array<i32: 1>} : vector<16x16xi32>
    %c15_i32 = arith.constant 15 : i32
    %14 = vector.broadcast %c15_i32 : i32 to vector<16x16xi32>
    %15 = arith.cmpi eq, %13, %14 : vector<16x16xi32>
    %cst_2 = arith.constant 0.000000e+00 : f32
    %16 = vector.broadcast %cst_2 : f32 to vector<16x16xf32>
    %17 = arith.select %15, %16, %12 : vector<16x16xi1>, vector<16x16xf32>
    %18 = arith.addf %9, %17 : vector<16x16xf32>
    %cst_3 = arith.constant 4.000000e+00 : f32
    %19 = vector.broadcast %cst_3 : f32 to vector<16x16xf32>
    %20 = arith.mulf %19, %1 : vector<16x16xf32>
    %21 = arith.subf %18, %20 : vector<16x16xf32>
    %c1_i32 = arith.constant 1 : i32
    %22 = tpu.dynamic_rotate %1 by %c1_i32 dim 0 : vector<16x16xf32>, i32 -> vector<16x16xf32>
    %23 = arith.addf %21, %22 : vector<16x16xf32>
    %c15_i32_4 = arith.constant 15 : i32
    %24 = tpu.dynamic_rotate %1 by %c15_i32_4 dim 0 : vector<16x16xf32>, i32 -> vector<16x16xf32>
    %25 = arith.addf %23, %24 : vector<16x16xf32>
    %26 = math.absf %25 : vector<16x16xf32>
    %c0_5 = arith.constant 0 : index
    %c0_6 = arith.constant 0 : index
    %c0_7 = arith.constant 0 : index
    %27 = vector.load %arg3[%c0_5, %c0_6, %c0_7] : memref<1x16x16xf32, #tpu.memory_space<vmem>>, vector<1x16x16xf32>
    %28 = vector.shape_cast %27 : vector<1x16x16xf32> to vector<16x16xf32>
    %29 = vector.shape_cast %26 : vector<16x16xf32> to vector<1x16x16xf32>
    tpu.vector_store %arg3[%c0_5, %c0_6, %c0_7], %29 {strides = array<i32>} : memref<1x16x16xf32, #tpu.memory_space<vmem>>, vector<1x16x16xf32>,
    %30 = vector.extract_strided_slice %1 {offsets = [0, 0], sizes = [1, 16], strides = [1, 1]} : vector<16x16xf32> to vector<1x16xf32>
    %31 = vector.extract_strided_slice %1 {offsets = [1, 0], sizes = [1, 16], strides = [1, 1]} : vector<16x16xf32> to vector<1x16xf32>
    %cst_8 = arith.constant 0.000000e+00 : f32
    %32 = vector.broadcast %cst_8 : f32 to vector<1x16xf32>
    %33 = arith.addf %32, %31 : vector<1x16xf32>
    %34 = vector.extract_strided_slice %30 {offsets = [0, 15], sizes = [1, 1], strides = [1, 1]} : vector<1x16xf32> to vector<1x1xf32>
    %35 = vector.extract_strided_slice %30 {offsets = [0, 0], sizes = [1, 15], strides = [1, 1]} : vector<1x16xf32> to vector<1x15xf32>
    %36 = tpu.concatenate %34, %35 in 1 : vector<1x1xf32>, vector<1x15xf32> -> vector<1x16xf32>
    %37 = tpu.iota {dimensions = array<i32: 1>} : vector<1x16xi32>
    %c0_i32_9 = arith.constant 0 : i32
    %38 = vector.broadcast %c0_i32_9 : i32 to vector<1x16xi32>
    %39 = arith.cmpi eq, %37, %38 : vector<1x16xi32>
    %cst_10 = arith.constant 0.000000e+00 : f32
    %40 = vector.broadcast %cst_10 : f32 to vector<1x16xf32>
    %41 = arith.select %39, %40, %36 : vector<1x16xi1>, vector<1x16xf32>
    %42 = arith.addf %33, %41 : vector<1x16xf32>
    %43 = vector.extract_strided_slice %30 {offsets = [0, 1], sizes = [1, 15], strides = [1, 1]} : vector<1x16xf32> to vector<1x15xf32>
    %44 = vector.extract_strided_slice %30 {offsets = [0, 0], sizes = [1, 1], strides = [1, 1]} : vector<1x16xf32> to vector<1x1xf32>
    %45 = tpu.concatenate %43, %44 in 1 : vector<1x15xf32>, vector<1x1xf32> -> vector<1x16xf32>
    %46 = tpu.iota {dimensions = array<i32: 1>} : vector<1x16xi32>
    %c15_i32_11 = arith.constant 15 : i32
    %47 = vector.broadcast %c15_i32_11 : i32 to vector<1x16xi32>
    %48 = arith.cmpi eq, %46, %47 : vector<1x16xi32>
    %cst_12 = arith.constant 0.000000e+00 : f32
    %49 = vector.broadcast %cst_12 : f32 to vector<1x16xf32>
    %50 = arith.select %48, %49, %45 : vector<1x16xi1>, vector<1x16xf32>
    %51 = arith.addf %42, %50 : vector<1x16xf32>
    %cst_13 = arith.constant 4.000000e+00 : f32
    %52 = vector.broadcast %cst_13 : f32 to vector<1x16xf32>
    %53 = arith.mulf %52, %30 : vector<1x16xf32>
    %54 = arith.subf %51, %53 : vector<1x16xf32>
    %55 = math.absf %54 : vector<1x16xf32>
    %c0_14 = arith.constant 0 : index
    %c0_15 = arith.constant 0 : index
    %c0_16 = arith.constant 0 : index
    %56 = vector.load %arg3[%c0_14, %c0_15, %c0_16] : memref<1x16x16xf32, #tpu.memory_space<vmem>>, vector<1x1x16xf32>
    %57 = vector.shape_cast %56 : vector<1x1x16xf32> to vector<1x16xf32>
    %58 = vector.shape_cast %55 : vector<1x16xf32> to vector<1x1x16xf32>
    tpu.vector_store %arg3[%c0_14, %c0_15, %c0_16], %58 {strides = array<i32>} : memref<1x16x16xf32, #tpu.memory_space<vmem>>, vector<1x1x16xf32>,
    %59 = vector.extract_strided_slice %1 {offsets = [15, 0], sizes = [1, 16], strides = [1, 1]} : vector<16x16xf32> to vector<1x16xf32>
    %60 = vector.extract_strided_slice %1 {offsets = [14, 0], sizes = [1, 16], strides = [1, 1]} : vector<16x16xf32> to vector<1x16xf32>
    %cst_17 = arith.constant 0.000000e+00 : f32
    %61 = vector.broadcast %cst_17 : f32 to vector<1x16xf32>
    %62 = arith.addf %60, %61 : vector<1x16xf32>
    %63 = vector.extract_strided_slice %59 {offsets = [0, 15], sizes = [1, 1], strides = [1, 1]} : vector<1x16xf32> to vector<1x1xf32>
    %64 = vector.extract_strided_slice %59 {offsets = [0, 0], sizes = [1, 15], strides = [1, 1]} : vector<1x16xf32> to vector<1x15xf32>
    %65 = tpu.concatenate %63, %64 in 1 : vector<1x1xf32>, vector<1x15xf32> -> vector<1x16xf32>
    %66 = tpu.iota {dimensions = array<i32: 1>} : vector<1x16xi32>
    %c0_i32_18 = arith.constant 0 : i32
    %67 = vector.broadcast %c0_i32_18 : i32 to vector<1x16xi32>
    %68 = arith.cmpi eq, %66, %67 : vector<1x16xi32>
    %cst_19 = arith.constant 0.000000e+00 : f32
    %69 = vector.broadcast %cst_19 : f32 to vector<1x16xf32>
    %70 = arith.select %68, %69, %65 : vector<1x16xi1>, vector<1x16xf32>
    %71 = arith.addf %62, %70 : vector<1x16xf32>
    %72 = vector.extract_strided_slice %59 {offsets = [0, 1], sizes = [1, 15], strides = [1, 1]} : vector<1x16xf32> to vector<1x15xf32>
    %73 = vector.extract_strided_slice %59 {offsets = [0, 0], sizes = [1, 1], strides = [1, 1]} : vector<1x16xf32> to vector<1x1xf32>
    %74 = tpu.concatenate %72, %73 in 1 : vector<1x15xf32>, vector<1x1xf32> -> vector<1x16xf32>
    %75 = tpu.iota {dimensions = array<i32: 1>} : vector<1x16xi32>
    %c15_i32_20 = arith.constant 15 : i32
    %76 = vector.broadcast %c15_i32_20 : i32 to vector<1x16xi32>
    %77 = arith.cmpi eq, %75, %76 : vector<1x16xi32>
    %cst_21 = arith.constant 0.000000e+00 : f32
    %78 = vector.broadcast %cst_21 : f32 to vector<1x16xf32>
    %79 = arith.select %77, %78, %74 : vector<1x16xi1>, vector<1x16xf32>
    %80 = arith.addf %71, %79 : vector<1x16xf32>
    %cst_22 = arith.constant 4.000000e+00 : f32
    %81 = vector.broadcast %cst_22 : f32 to vector<1x16xf32>
    %82 = arith.mulf %81, %59 : vector<1x16xf32>
    %83 = arith.subf %80, %82 : vector<1x16xf32>
    %84 = math.absf %83 : vector<1x16xf32>
    %c0_23 = arith.constant 0 : index
    %c15 = arith.constant 15 : index
    %c0_24 = arith.constant 0 : index
    %85 = vector.load %arg3[%c0_23, %c15, %c0_24] : memref<1x16x16xf32, #tpu.memory_space<vmem>>, vector<1x1x16xf32>
    %86 = vector.shape_cast %85 : vector<1x1x16xf32> to vector<1x16xf32>
    %87 = vector.shape_cast %84 : vector<1x16xf32> to vector<1x1x16xf32>
    tpu.vector_store %arg3[%c0_23, %c15, %c0_24], %87 {strides = array<i32>} : memref<1x16x16xf32, #tpu.memory_space<vmem>>, vector<1x1x16xf32>,
    return
  }
  func.func @transform_0(%arg0: i32, %arg1: i32) -> (i32, i32, i32) {
    %c0_i32 = arith.constant 0 : i32
    %c0_i32_0 = arith.constant 0 : i32
    return %arg0, %arg1, %c0_i32 : i32, i32, i32
  }
  func.func @transform_1(%arg0: i32, %arg1: i32) -> (i32, i32, i32) {
    %c0_i32 = arith.constant 0 : i32
    %c0_i32_0 = arith.constant 0 : i32
    return %arg0, %arg1, %c0_i32 : i32, i32, i32
  }
}

</mosaic_0001>

<bundles_post_ra>
// kernel: tpu_custom_call.1
= control target key start
LH: loop header
LB: loop body
LE: loop exit
PB: predicated region body
PF: predicated region fallthrough
CT: control target
= control target key end

     0   :  { %6 = vsyncpa [#allocation3], 0  ;;  %s740_s0 = inlined_call_operand.hbm [shape: f32[2,16,16], index: 0, kind: input, shape index: {}]   ;;  %s741_s1 = inlined_call_operand.hbm [shape: f32[2,16,16], index: 1, kind: output, shape index: {}]  }
   0x1   :  { %8 = vsyncpa [#allocation3 + $0x1], 0 }
   0x2   :  { %9 = vsyncpa [#allocation4], 0 }
   0x3   :  { %11 = vsyncpa [#allocation4 + $0x1], 0  ;;  %s576_s6 = smov 0   ;;  %s578_s7 = smov 0  }
   0x4   :  { %s580_s8 = smov 0   ;;  %s582_s9 = smov 0  }
   0x5   :  { %s584_s10 = smov 0   ;;  %s586_s11 = smov 0  }
   0x6 LB: > { %s359_s12 = sadd.s32 4294967295, %s554_s11   ;;  %s360_s13 = sadd.s32 4294967294, %s554_s11   ;;  %s554_s11 = sphi %s586_s11, %s17_s11   ;;  %s550_s10 = sphi %s584_s10, %s752_s10   ;;  %s546_s9 = sphi %s582_s9, %s751_s9   ;;  %s542_s8 = sphi %s580_s8, %s750_s8   ;;  %s538_s7 = sphi %s578_s7, %s749_s7   ;;  %s534_s6 = sphi %s576_s6, %s748_s6  }
   0x7   : > { %s29_s14 = sadd.s32 1, %s550_s10  ;;  %s38_s15 = sadd.s32 1, %s542_s8 }
   0x8   : > { %p31_p0 = scmp.ge.s32.totalorder %s29_s14, 2  ;;  %p45_p1 = scmp.ne.s32.totalorder %s542_s8, %s538_s7 }
   0x9   : > { %p46_p2 = scmp.eq.s32.totalorder %s554_s11, 0  ;;  %p51_p3 = scmp.ne.s32.totalorder %s538_s7, %s534_s6 }
   0xa   : > { %s754_s14 = smov (%p31_p0, %s29_s14), 0  ;;  %p52_p5 = scmp.eq.s32.totalorder %s359_s12, 0 }
   0xb   : > { %p617_p4 = por %p46_p2, %p45_p1  ;;  %s33_s17 = ssub.s32 %s550_s10, %s754_s14 }
   0xc   : > { %p77_p6 = scmp.eq.s32.totalorder %s359_s12, 1  ;;  %p36_p7 = scmp.eq.s32.totalorder %s33_s17, 0 }
   0xd   : > { %p623_p8 = por %p52_p5, %p51_p3  ;;  %p83_p10 = scmp.eq.s32.totalorder %s360_s13, 1 }
   0xe   : > { %p627_p9 = por %p77_p6, %p45_p1  ;;  %p388_p13 = scmp.lt.s32.totalorder %s554_s11, 2 }
   0xf   : > { %s632_s20 = scalar_select %p36_p7, %s542_s8, %s38_s15  }
  0x10   : > { %p634_p11 = por %p83_p10, %p51_p3  ;;  %s103_s22 = sand.u32 1, %s542_s8  }
  0x11   : > { %s363_s23 = sshll.u32 %s103_s22, 4  ;;  %s374_s24 = sshll.u32 %s550_s10, 8 }
  0x12   : > { %s115_s27 = scalar_lea.hbm %s740_s0, %s374_s24  ;;  %s107_s28 = scalar_lea.vmem [#allocation2], %s363_s23 }
  0x13   : > { %s116_s29 = sshll.u32 %s107_s28, 4  ;;  %p647_p0 = pnand %p388_p13, %p617_p4  ;;  %s117_s29 = int_to_ptr.vmem [resolvable:$true] %s116_s29 }
  0x14   : > { %p366_p1 = scmp.ge.s32.totalorder %s554_s11, 1  ;;  %s104_s2 = scalar_lea.sflag [#allocation3], %s103_s22 }
  0x15   : > { %p448_p2 = pneg %p647_p0  ;;  %s459_s3 = scalar_lea.vmem %s117_s29, 256 }
  0x16   : > { %p460_p3 = scmp.ne.s32.totalorder %s117_s29, %s459_s3  ;;  %s556_s4 = smov [#allocation2]  }
  0x17   : > { %s464_s5 = sshll.u32 %s556_s4, 4  ;;  %s465_s5 = int_to_ptr.vmem [resolvable:$false] %s464_s5 }
  0x18   : > { %p462_p5 = pnand %p460_p3, %p448_p2  ;;  %s466_s12 = scalar_lea.vmem %s465_s5, 512 }
  0x19   : > { %p467_p7 = scmp.lt.s32.totalorder %s117_s29, %s465_s5  ;;  %p468_p10 = scmp.lt.s32.totalorder %s466_s12, %s459_s3 }
  0x1a   : > { %p463_p6 = pneg %p462_p5 }
  0x1b   : > { %p469_p12 = por %p468_p10, %p467_p7 }
  0x1d   : > { %p470_p4 = pnand %p469_p12, %p463_p6 }
  0x1f   : > { %473 = shalt.err (!%p470_p4)
}
  0x20   : > { %s557_s13 = smov 128   ;;  %s558_s15 = smov 8  }
  0x21   : > { %383 = dma.hbm_to_vmem [thread:$0]  (!%p647_p0), %s115_s27, 256, %s117_s29, %s104_s2, %s557_s13, %s557_s13, %s558_s15  }
  0x22   : > { %p124_p13 = scmp.lt.s32.totalorder %s554_s11, 3 }
  0x24   : > { %p125_p2 = pnand %p366_p1, %p124_p13 }
  0x25   : > { %s660_s16 = sand.u32 (!%p125_p2), 1, %s538_s7  }
  0x26   : > { %128 = sbr.rel (%p125_p2) target bundleno = 200 (0xc8), region = 24  ;;  %s367_s17 = sshll.u32 (!%p125_p2), %s660_s16, 4 }
  0x27   : > { %s131_s22 = scalar_lea.sflag (!%p125_p2), [#allocation3], %s660_s16  ;;  %s134_s23 = scalar_lea.vmem (!%p125_p2), [#allocation2], %s367_s17 }
  0x2b   : > { %525 = dma.done.wait (%p623_p8), %s131_s22, 256  }
  0x2c   : > { %527 = vsyncadd (%p623_p8), %s131_s22, 4294967040  ;;  %v670_v0 = vld [vmem:[%s134_s23] sm:$0xff]  ;;  %s559_s24 = smov 1   ;;  %s560_s25 = smov 113   ;;  %v156_v1 = vld [vmem:[%s134_s23 + $0x8] sm:$0xff]  ;;  %v174_v2 = vlaneseq  ;;  %vm171_vm0 = vcmask 7168  }
  0x2d   : > { %165 = vrot.lane.b32.xlu1 %v670_v0, %s559_s24  ;;  %159 = vrot.lane.b32.xlu0 %v670_v0, %s560_s25  ;;  %s561_s26 = smov 127   ;;  %s562_s27 = smov 15   ;;  %vm191_vm2 = vcmask 121856   ;;  %v200_v17 = vmul.f32 4.0, %v156_v1  ;;  %v204_v18 = vrot.slane %v156_v1, 7  ;;  %v203_v20 = vrot.slane %v670_v0, 7 }
  0x2e   : > { %v175_v4 = vand.u32 127, %v174_v2  ;;  %v206_v10 = vshrl.u32 %v174_v2, 7  ;;  %v199_v22 = vmul.f32 4.0, %v670_v0  ;;  %v213_v23 = vrot.slane %v156_v1, 1  ;;  %s375_s18 = sshll.u32 %s546_s9, 8  ;;  %s152_s28 = scalar_lea.vmem [#allocation5], %s367_s17 }
  0x2f   : > { %v212_v25 = vrot.slane %v670_v0, 1  ;;  %v250_v35 = vrot.slane %v200_v17, 1  ;;  %s272_s29 = sshll.u32 %s152_s28, 4  ;;  %vm221_vm6 = vcmask 130048   ;;  %vm254_vm7 = vcmask 129030   ;;  %s690_s3 = scalar_lea.hbm %s741_s1, %s375_s18  ;;  %s692_s29 = int_to_ptr.vmem [resolvable:$true] %s272_s29 }
  0x30   : > { %vm176_vm1 = vcmp.eq.s32.totalorder %v175_v4, 0  ;;  %vm214_vm3 = vcmp.lt.s32.totalorder %v206_v10, 7  ;;  %vm194_vm4 = vcmp.eq.s32.totalorder %v175_v4, 15  ;;  %vm207_vm5 = vcmp.lt.s32.totalorder %v206_v10, 1  ;;  %s257_s9 = scalar_lea.sflag [#allocation4], %s660_s16  ;;  %s474_s4 = scalar_lea.vmem %s692_s29, 256 }
  0x31   : > { %167 = vrot.lane.b32.xlu1 %v156_v1, %s559_s24  ;;  %161 = vrot.lane.b32.xlu0 %v156_v1, %s560_s25  ;;  %v208_v36 = vsel %vm207_vm5, %v203_v20, %v204_v18  ;;  %v209_v37 = vsel %vm207_vm5, %v204_v18, %v203_v20  ;;  %v234_v38 = vrot.slane %v199_v22, 7  ;;  %v216_v43 = vsel %vm214_vm3, %v213_v23, %v212_v25  ;;  %p475_p8 = scmp.ne.s32.totalorder %s692_s29, %s474_s4  ;;  %s563_s5 = smov [#allocation5]  }
  0x32   : > { %v215_v44 = vsel %vm214_vm3, %v212_v25, %v213_v23  ;;  %vm238_vm8 = vcmask 123905   ;;  %s478_s12 = sshll.u32 %s563_s5, 4  ;;  %s479_s12 = int_to_ptr.vmem [resolvable:$false] %s478_s12 }
  0x33   : > { %p476_p12 = pnand %p475_p8, %p627_p9  ;;  %s480_s13 = scalar_lea.vmem %s479_s12, 512 }
  0x34   : > { %p481_p1 = scmp.lt.s32.totalorder %s692_s29, %s479_s12  ;;  %p482_p3 = scmp.lt.s32.totalorder %s480_s13, %s474_s4 }
  0x35   : > { %181 = vrot.lane.b32.xlu1 %v156_v1, %s561_s26  ;;  %179 = vrot.lane.b32.xlu0 %v670_v0, %s561_s26  ;;  %p477_p0 = pneg %p476_p12 }
  0x36   : > { %p483_p5 = por %p482_p3, %p481_p1 }
  0x38   : > { %p484_p6 = pnand %p483_p5, %p477_p0 }
  0x39   : > { %187 = vrot.lane.b32.xlu1 %v156_v1, %s562_s27  ;;  %185 = vrot.lane.b32.xlu0 %v670_v0, %s562_s27 }
  0x9f   : > { %v166_v3 = vpop.permute.xlu1 %165  ;;  %v160_v5 = vpop.permute.xlu0 %159 }
  0xa0   : > { %v172_v6 = vsel %vm171_vm0, %v160_v5, %v166_v3 }
  0xa1   : > { %v177_v11 = vsel %vm176_vm1, 0.0, %v172_v6 }
  0xa2   : > { %v226_v15 = vrot.slane %v177_v11, 7 }
  0xa3   : > { %v168_v7 = vpop.permute.xlu1 %167  ;;  %v162_v8 = vpop.permute.xlu0 %161 }
  0xa4   : > { %v173_v9 = vsel %vm171_vm0, %v162_v8, %v168_v7  ;;  %v228_v27 = vadd.f32 %v226_v15, %v670_v0 }
  0xa5   : > { %v178_v12 = vsel %vm176_vm1, 0.0, %v173_v9 }
  0xa6   : > { %v242_v16 = vrot.slane %v178_v12, 1 }
  0xa7   : > { %v182_v13 = vpop.permute.xlu1 %181  ;;  %v180_v14 = vpop.permute.xlu0 %179 }
  0xa8   : > { %v244_v28 = vadd.f32 %v242_v16, %v156_v1 }
  0xab   : > { %v188_v19 = vpop.permute.xlu1 %187  ;;  %v186_v21 = vpop.permute.xlu0 %185 }
  0xac   : > { %v193_v24 = vsel %vm191_vm2, %v182_v13, %v188_v19  ;;  %v192_v26 = vsel %vm191_vm2, %v180_v14, %v186_v21 }
  0xad   : > { %v196_v29 = vsel %vm194_vm4, 0.0, %v193_v24  ;;  %v195_v30 = vsel %vm194_vm4, 0.0, %v192_v26 }
  0xae   : > { %v198_v31 = vadd.f32 %v196_v29, %v178_v12  ;;  %v246_v32 = vrot.slane %v196_v29, 1  ;;  %v197_v33 = vadd.f32 %v195_v30, %v177_v11  ;;  %v230_v34 = vrot.slane %v195_v30, 7 }
  0xb0   : > { %v202_v39 = vsub.f32 %v198_v31, %v200_v17  ;;  %v248_v40 = vadd.f32 %v246_v32, %v244_v28  ;;  %v201_v41 = vsub.f32 %v197_v33, %v199_v22  ;;  %v232_v42 = vadd.f32 %v230_v34, %v228_v27 }
  0xb2   : > { %v211_v45 = vadd.f32 %v208_v36, %v202_v39  ;;  %v210_v46 = vadd.f32 %v209_v37, %v201_v41  ;;  %v252_v47 = vsub.f32 %v248_v40, %v250_v35  ;;  %v236_v48 = vsub.f32 %v232_v42, %v234_v38 }
  0xb4   : > { %v218_v49 = vadd.f32 %v216_v43, %v211_v45  ;;  %v217_v50 = vadd.f32 %v215_v44, %v210_v46  ;;  %v253_v53 = vand.u32 2147483647, %v252_v47  ;;  %v237_v54 = vand.u32 2147483647, %v236_v48 }
  0xb6   : > { %v220_v51 = vand.u32 2147483647, %v218_v49  ;;  %v219_v52 = vand.u32 2147483647, %v217_v50 }
  0xb8   : > { %223 = vst.msk [vmem:[%s152_s28 + $0x8] sm:$0xff] %vm221_vm6, %v220_v51  ;;  %222 = vst.msk [vmem:[%s152_s28] sm:$0xff] %vm221_vm6, %v219_v52 }
  0xb9   : > { %255 = vst.msk [vmem:[%s152_s28 + $0x9] sm:$0x40] %vm254_vm7, %v253_v53 }
  0xba   : > { %239 = vst.msk [vmem:[%s152_s28 - $0x1] sm:$0x2] %vm238_vm8, %v237_v54 }
  0xbb   : > { %487 = shalt.err (!%p484_p6)
}
  0xbc   : > { %s488_s15 = scalar_lea.hbm %s690_s3, 256  ;;  %s492_s23 = scalar_lea.hbm %s741_s1, 512 }
  0xbd   : > { %p489_p7 = scmp.ne.s32.totalorder %s690_s3, %s488_s15  ;;  %p493_p13 = scmp.lt.s32.totalorder %s690_s3, %s741_s1 }
  0xbe   : > { %p494_p2 = scmp.lt.s32.totalorder %s492_s23, %s488_s15 }
  0xbf   : > { %p490_p10 = pnand %p489_p7, %p627_p9 }
  0xc0   : > { %p495_p8 = por %p494_p2, %p493_p13 }
  0xc1   : > { %p491_p4 = pneg %p490_p10 }
  0xc3   : > { %p496_p12 = pnand %p495_p8, %p491_p4 }
  0xc5   : > { %499 = shalt.err (!%p496_p12)
}
  0xc6   : > { %s564_s26 = smov 128   ;;  %s565_s27 = smov 8  }
  0xc7   : > { %378 = dma.vmem_to_hbm [thread:$0]  (%p627_p9), %s692_s29, 256, %s690_s3, %s257_s9, %s564_s26, %s564_s26, %s565_s27  }
  0xc8 PF: > { %s287_s18 = sand.u32 1, %s534_s6   ;;  %p747_p0 = scmp.ge.s32.totalorder %s554_s11, 2 }
  0xc9   : > { %s288_s28 = scalar_lea.sflag [#allocation4], %s287_s18 }
  0xca   : > { %p385_p1 = pnand %p747_p0, %p634_p11 }
  0xcc   : > { %p386_p3 = pneg %p385_p1 }
  0xce   : > { %529 = dma.done.wait (%p386_p3), %s288_s28, 256  }
  0xcf   : > { %531 = vsyncadd (%p386_p3), %s288_s28, 4294967040  ;;  %s17_s11 = sadd.s32 1, %s554_s11   ;;  %s748_s6 = smov %s538_s7 }
  0xd0   : > { %p14_p5 = scmp.ge.s32.totalorder %s17_s11, 4   ;;  %s749_s7 = smov %s542_s8 }
  0xd1   : > { %s750_s8 = smov %s632_s20  ;;  %s751_s9 = smov %s550_s10 }
  0xd2   : > { %s752_s10 = smov %s754_s14  ;;  %16 = sbr.rel (!%p14_p5) target bundleno = 6 (0x6), region = 69 }
  0xd7   :  { %293 = vsyncpa [#allocation3], 1 }
  0xd8   :  { %295 = vsyncpa [#allocation3 + $0x1], 1 }
  0xd9   :  { %296 = vsyncpa [#allocation4], 1 }
  0xda   :  { %298 = vsyncpa [#allocation4 + $0x1], 1 }

</bundles_post_ra>
